<compile_context>
chip_gen: v5e
topology: v5e:2x2
jax: 0.10.0
libtpu: 0.0.40
codegen_flags: <defaults>
</compile_context>

<pallas_src>
import functools

import jax
import jax.numpy as jnp
from jax import lax
from jax.experimental import pallas as pl
from jax.experimental.pallas import tpu as pltpu

LANE = 128


def _single_stage_kernel(dilations, seq_len,
                         x_ref, mask_ref,
                         w_in_ref, b_in_ref,
                         wm_ref, w0_ref, wp_ref, bd_ref,
                         w_out_ref, b_out_ref,
                         o_ref):
    nt = x_ref.shape[0]              # bb * T rows (whole sequences per block)

    x = x_ref[...]                   # (nt, dim) f32
    m = mask_ref[...]                # (nt, 1)   f32

    # conv_1x1: pointwise Conv1d == per-row matmul over channels (bf16 MXU, f32 acc).
    out = jnp.dot(x.astype(jnp.bfloat16), w_in_ref[...],
                  preferred_element_type=jnp.float32) + b_in_ref[...]
    c = out.shape[-1]

    # Per-row timestep within its own sequence (block holds whole sequences, so a
    # cheap sublane-iota mod T suffices; no reshapes / relayouts).
    t_idx = lax.broadcasted_iota(jnp.int32, (nt, 1), 0) % seq_len

    # Hoisted broadcasts / boundary predicates: JAX does not CSE broadcast_in_dim
    # across unrolled iterations, so build them once per block.
    m_bc = jnp.broadcast_to(m, (nt, c))
    valid = [((t_idx >= d).astype(jnp.float32),
              (t_idx < seq_len - d).astype(jnp.float32)) for d in dilations]

    # L is small here, so the layer loop is statically unrolled with static shifts.
    # For deep stacks (L ~ 10+) switch to lax.fori_loop so only one layer's weights
    # stay live.
    for l, d in enumerate(dilations):
        vm, vp = valid[l]
        out_b = out.astype(jnp.bfloat16)
        # Shifted activations via XLU roll (static, non-negative shift); the
        # boundary mask zeroes rows a circular roll drags across sequence
        # boundaries (emulates Conv1d zero padding after batch fusion).
        x_m = (pltpu.roll(out, shift=d, axis=0) * vm).astype(jnp.bfloat16)
        x_p = (pltpu.roll(out, shift=nt - d, axis=0) * vp).astype(jnp.bfloat16)
        # Three accumulated dots (taps t-d, t, t+d); BatchNorm scale folded into
        # the weights, conv bias + BN shift folded into bd (eval-mode BN).
        conv = jnp.dot(x_m, wm_ref[l], preferred_element_type=jnp.float32)
        conv = conv + jnp.dot(out_b, w0_ref[l], preferred_element_type=jnp.float32)
        conv = conv + jnp.dot(x_p, wp_ref[l], preferred_element_type=jnp.float32)
        conv = jnp.maximum(conv + bd_ref[l], 0.0)          # bias + ReLU
        out = (out + conv) * m_bc                           # residual + mask

    # conv_out: classes zero-padded to a lane-dense width, stored in bf16.
    logits = jnp.dot(out.astype(jnp.bfloat16), w_out_ref[...],
                     preferred_element_type=jnp.float32) + b_out_ref[...]
    o_ref[...] = (logits * m).astype(o_ref.dtype)


def _pick_batch_block(n, t, max_rows=2048):
    """Pick how many whole sequences go into one grid block.

    Constraints / preferences:
      * whole sequences per block (required for in-block roll correctness),
      * >= 2 grid steps whenever n >= 2 so both v7x TensorCores get work,
      * rows = bb*t a multiple of 16 (sublane-aligned for f32 and bf16 blocks),
      * rows as large as possible up to max_rows (fills the MXU M dimension,
        amortizes the ~0.35 us per-grid-step overhead, fits 32 MiB scoped VMEM).
    """
    cap = n if n == 1 else n // 2
    best = None
    for bb in range(1, cap + 1):
        if n % bb or (bb * t) % 16:
            continue
        if bb * t <= max_rows:
            best = bb
    if best is not None:
        return best
    # Fallbacks: bb=1 (aligned but long sequence) or a single whole-array block
    # (always BlockSpec-legal since the block equals the full array dims).
    return 1 if t % 16 == 0 else n


def single_stage_forward(x_ntc, mask_nt1, kparams, dilations, num_classes):
    N, T, dim = x_ntc.shape
    C = kparams["w_in"].shape[1]
    KP = kparams["w_out"].shape[1]
    L = len(dilations)

    bb = _pick_batch_block(N, T)
    grid = (N // bb,)
    rows = bb * T

    # Flatten batch/time in the wrapper (no in-kernel reshapes / relayouts).
    x_flat = x_ntc.reshape(N * T, dim)
    m_flat = mask_nt1.reshape(N * T, 1)

    kernel = functools.partial(_single_stage_kernel, tuple(dilations), T)

    def const_spec(a):
        # Full-array block with a constant index map (weights / biases).
        # NOTE: these are never re-fetched; pipeline_mode=pl.Buffered(1) (or staging
        # into scratch) would halve their resident VMEM — negligible at this C, so
        # the default double-buffering is kept for compile safety.
        nd = a.ndim
        return pl.BlockSpec(a.shape, lambda b, nd=nd: (0,) * nd)

    flops = 2 * N * T * (dim * C + L * 3 * C * C + C * KP)
    bytes_accessed = (int(x_flat.size) * 4 + int(m_flat.size) * 4
                      + N * T * KP * 2
                      + sum(int(v.size) * v.dtype.itemsize for v in kparams.values()))
    cost = pl.CostEstimate(flops=flops, transcendentals=0,
                           bytes_accessed=bytes_accessed)

    out_flat = pl.pallas_call(
        kernel,
        out_shape=jax.ShapeDtypeStruct((N * T, KP), jnp.bfloat16),
        grid=grid,
        in_specs=[
            pl.BlockSpec((rows, dim), lambda b: (b, 0)),
            pl.BlockSpec((rows, 1), lambda b: (b, 0)),
            const_spec(kparams["w_in"]), const_spec(kparams["b_in"]),
            const_spec(kparams["dil_wm"]), const_spec(kparams["dil_w0"]),
            const_spec(kparams["dil_wp"]), const_spec(kparams["dil_b"]),
            const_spec(kparams["w_out"]), const_spec(kparams["b_out"]),
        ],
        out_specs=pl.BlockSpec((rows, KP), lambda b: (b, 0)),
        compiler_params=pltpu.CompilerParams(
            dimension_semantics=("parallel",),
            # >= v5e's 16 MiB default, == v6e/v7x default; re-derive together with
            # max_rows when scaling T or C to realistic MS-TCN sizes.
            vmem_limit_bytes=32 * 1024 * 1024),
        cost_estimate=cost,
    )(x_flat, m_flat,
      kparams["w_in"], kparams["b_in"],
      kparams["dil_wm"], kparams["dil_w0"], kparams["dil_wp"], kparams["dil_b"],
      kparams["w_out"], kparams["b_out"])

    return out_flat.reshape(N, T, KP)[..., :num_classes]


def make_params(key, dim, C, K, L):
    """Synthetic deterministic parameters in PyTorch layout/convention."""
    ks = jax.random.split(key, 10)
    s = 0.1
    return {
        "w1": s * jax.random.normal(ks[0], (C, dim), jnp.float32),      # conv_1x1.weight[:, :, 0]
        "b1": s * jax.random.normal(ks[1], (C,), jnp.float32),
        "wd": s * jax.random.normal(ks[2], (L, C, C, 3), jnp.float32),  # conv_dilated.weight (out,in,k)
        "bd": s * jax.random.normal(ks[3], (L, C), jnp.float32),
        "bn_gamma": 1.0 + 0.1 * jax.random.normal(ks[4], (L, C), jnp.float32),
        "bn_beta": 0.1 * jax.random.normal(ks[5], (L, C), jnp.float32),
        "bn_mean": 0.1 * jax.random.normal(ks[6], (L, C), jnp.float32),
        "bn_var": 1.0 + 0.1 * jax.random.uniform(ks[7], (L, C), jnp.float32),
        "wo": s * jax.random.normal(ks[8], (K, C), jnp.float32),        # conv_out.weight[:, :, 0]
        "bo": s * jax.random.normal(ks[9], (K,), jnp.float32),
    }


def prepare_kernel_params(p, eps=1e-5):
    """Fold eval-mode BatchNorm into the dilated conv, split the 3 taps, and cast
    matmul weights to bf16 (f32 accumulation happens on the MXU)."""
    C = p["w1"].shape[0]
    K = p["wo"].shape[0]
    scale = p["bn_gamma"] / jnp.sqrt(p["bn_var"] + eps)          # (L, C)
    shift = p["bn_beta"] - p["bn_mean"] * scale                  # (L, C)

    def tap(k):
        # (L, Cout, Cin) -> (L, Cin, Cout); fold BN scale into the output columns.
        w = jnp.transpose(p["wd"][..., k], (0, 2, 1)) * scale[:, None, :]
        return w.astype(jnp.bfloat16)

    bd = (p["bd"] * scale + shift)[:, None, :]                   # (L, 1, C) fused bias, f32
    KP = ((K + LANE - 1) // LANE) * LANE                         # lane-dense output width
    wo = jnp.zeros((C, KP), jnp.float32).at[:, :K].set(jnp.transpose(p["wo"]))
    bo = jnp.zeros((1, KP), jnp.float32).at[:, :K].set(p["bo"][None, :])
    return {
        "w_in": jnp.transpose(p["w1"]).astype(jnp.bfloat16),     # (dim, C) bf16
        "b_in": p["b1"][None, :],                                # (1, C)   f32
        "dil_wm": tap(0),                                        # (L, C, C) bf16  (tap t-d)
        "dil_w0": tap(1),                                        # (L, C, C) bf16  (tap t)
        "dil_wp": tap(2),                                        # (L, C, C) bf16  (tap t+d)
        "dil_b": bd,                                             # (L, 1, C) f32
        "w_out": wo.astype(jnp.bfloat16),                        # (C, KP)  bf16
        "b_out": bo,                                             # (1, KP)  f32
    }


def reference_forward(x_nct, mask_nkt, p, dilations, eps=1e-5):
    """Pure-JAX NCT reference matching the PyTorch module (BatchNorm in eval mode)."""
    m = mask_nkt[:, 0:1, :]
    out = jnp.einsum("nct,fc->nft", x_nct, p["w1"]) + p["b1"][None, :, None]
    for l, d in enumerate(dilations):
        conv = lax.conv_general_dilated(
            out, p["wd"][l], window_strides=(1,), padding=[(d, d)],
            rhs_dilation=(d,), dimension_numbers=("NCH", "OIH", "NCH"))
        conv = conv + p["bd"][l][None, :, None]
        inv = p["bn_gamma"][l] / jnp.sqrt(p["bn_var"][l] + eps)
        conv = (conv - p["bn_mean"][l][None, :, None]) * inv[None, :, None] \
            + p["bn_beta"][l][None, :, None]
        conv = jnp.maximum(conv, 0.0)
        out = (out + conv) * m
    logits = jnp.einsum("nct,kc->nkt", out, p["wo"]) + p["bo"][None, :, None]
    return logits * m


if __name__ == "__main__":
    # SingleStageModel(num_layers=3, num_f_maps=32, dim=4, num_classes=8, dil=[1, 2, 4])
    N, dim, T = 2, 4, 16
    num_f_maps, num_classes, num_layers = 32, 8, 3
    dilations = (1, 2, 4)

    key = jax.random.PRNGKey(0)
    k_x, k_m, k_p = jax.random.split(key, 3)

    raw = make_params(k_p, dim, num_f_maps, num_classes, num_layers)
    kparams = prepare_kernel_params(raw)

    # PyTorch-style inputs: x (N, dim, T), mask (N, num_classes, T).
    x_nct = jax.random.normal(k_x, (N, dim, T), jnp.float32)
    mask_nkt = (jax.random.uniform(k_m, (N, num_classes, T)) > 0.3).astype(jnp.float32)

    # Kernel-layout inputs (NTC): channels on lanes.
    x_ntc = jnp.transpose(x_nct, (0, 2, 1))                      # (N, T, dim)
    mask_nt1 = jnp.transpose(mask_nkt[:, 0:1, :], (0, 2, 1))     # (N, T, 1)

    out_ntk = single_stage_forward(x_ntc, mask_nt1, kparams, dilations, num_classes)
    out_nkt = jnp.transpose(out_ntk.astype(jnp.float32), (0, 2, 1))   # back to (N, K, T)
    jax.block_until_ready(out_nkt)

    ref_nkt = reference_forward(x_nct, mask_nkt, raw, dilations)
    err = float(jnp.max(jnp.abs(out_nkt - ref_nkt)))
    # Tolerance loosened vs the pure-f32 version: MXU operands are bf16 (f32 acc)
    # and the logits are stored in bf16.
    assert err < 5e-2, f"max abs err {err}"
    print("KERNEL_OK")
</pallas_src>

<mosaic_0001>
module attributes {stable_mosaic.version = 11 : i64} {
  func.func @_single_stage_kernel(%arg0: i32, %arg1: memref<16x4xf32, #tpu.memory_space<vmem>>, %arg2: memref<16x1xf32, #tpu.memory_space<vmem>>, %arg3: memref<4x32xbf16, #tpu.memory_space<vmem>>, %arg4: memref<1x32xf32, #tpu.memory_space<vmem>>, %arg5: memref<3x32x32xbf16, #tpu.memory_space<vmem>>, %arg6: memref<3x32x32xbf16, #tpu.memory_space<vmem>>, %arg7: memref<3x32x32xbf16, #tpu.memory_space<vmem>>, %arg8: memref<3x1x32xf32, #tpu.memory_space<vmem>>, %arg9: memref<32x128xbf16, #tpu.memory_space<vmem>>, %arg10: memref<1x128xf32, #tpu.memory_space<vmem>>, %arg11: memref<16x128xbf16, #tpu.memory_space<vmem>>) attributes {dimension_semantics = [#tpu.dimension_semantics<parallel>], iteration_bounds = array<i64: 2>, scalar_prefetch = 0 : i64, scratch_operands = 0 : i64, tpu.core_type = #tpu.core_type<tc>, window_params = [{transform_indices = @transform_0, window_bounds = array<i64: 16, 4>}, {transform_indices = @transform_1, window_bounds = array<i64: 16, 1>}, {pipeline_mode = #tpu.pipeline_mode<synchronous>, transform_indices = @transform_2, window_bounds = array<i64: 4, 32>}, {pipeline_mode = #tpu.pipeline_mode<synchronous>, transform_indices = @transform_3, window_bounds = array<i64: 1, 32>}, {pipeline_mode = #tpu.pipeline_mode<synchronous>, transform_indices = @transform_4, window_bounds = array<i64: 3, 32, 32>}, {pipeline_mode = #tpu.pipeline_mode<synchronous>, transform_indices = @transform_5, window_bounds = array<i64: 3, 32, 32>}, {pipeline_mode = #tpu.pipeline_mode<synchronous>, transform_indices = @transform_6, window_bounds = array<i64: 3, 32, 32>}, {pipeline_mode = #tpu.pipeline_mode<synchronous>, transform_indices = @transform_7, window_bounds = array<i64: 3, 1, 32>}, {pipeline_mode = #tpu.pipeline_mode<synchronous>, transform_indices = @transform_8, window_bounds = array<i64: 32, 128>}, {pipeline_mode = #tpu.pipeline_mode<synchronous>, transform_indices = @transform_9, window_bounds = array<i64: 1, 128>}, {transform_indices = @transform_10, window_bounds = array<i64: 16, 128>}]} {
    %c0 = arith.constant 0 : index
    %c0_0 = arith.constant 0 : index
    %0 = vector.load %arg1[%c0, %c0_0] : memref<16x4xf32, #tpu.memory_space<vmem>>, vector<16x4xf32>
    %c0_1 = arith.constant 0 : index
    %c0_2 = arith.constant 0 : index
    %1 = vector.load %arg2[%c0_1, %c0_2] : memref<16x1xf32, #tpu.memory_space<vmem>>, vector<16x1xf32>
    %2 = arith.truncf %0 : vector<16x4xf32> to vector<16x4xbf16>
    %c0_3 = arith.constant 0 : index
    %c0_4 = arith.constant 0 : index
    %3 = vector.load %arg3[%c0_3, %c0_4] : memref<4x32xbf16, #tpu.memory_space<vmem>>, vector<4x32xbf16>
    %cst = arith.constant dense<0.000000e+00> : vector<16x32xf32>
    %4 = tpu.matmul %2, %3, %cst {dimension_numbers = #tpu.dot_dimension_numbers<[1], [0], [0], [1], [0, 0, 1, 1], [], []>} : vector<16x4xbf16>, vector<4x32xbf16>, vector<16x32xf32> -> vector<16x32xf32>
    %c0_5 = arith.constant 0 : index
    %c0_6 = arith.constant 0 : index
    %5 = vector.load %arg4[%c0_5, %c0_6] : memref<1x32xf32, #tpu.memory_space<vmem>>, vector<1x32xf32>
    %6 = vector.broadcast %5 : vector<1x32xf32> to vector<16x32xf32>
    %7 = arith.addf %4, %6 : vector<16x32xf32>
    %8 = tpu.iota {dimensions = array<i32: 0>} : vector<16x1xi32>
    %c16_i32 = arith.constant 16 : i32
    %c0_i32 = arith.constant 0 : i32
    %9 = arith.cmpi eq, %c16_i32, %c0_i32 : i32
    %c1_i32 = arith.constant 1 : i32
    %10 = arith.select %9, %c1_i32, %c16_i32 : i32
    %11 = vector.broadcast %10 : i32 to vector<16x1xi32>
    %12 = arith.remsi %8, %11 : vector<16x1xi32>
    %c0_i32_7 = arith.constant 0 : i32
    %13 = vector.broadcast %c0_i32_7 : i32 to vector<16x1xi32>
    %14 = arith.cmpi ne, %12, %13 : vector<16x1xi32>
    %c0_i32_8 = arith.constant 0 : i32
    %15 = vector.broadcast %c0_i32_8 : i32 to vector<16x1xi32>
    %16 = arith.cmpi slt, %12, %15 : vector<16x1xi32>
    %c0_i32_9 = arith.constant 0 : i32
    %17 = arith.cmpi slt, %10, %c0_i32_9 : i32
    %18 = vector.broadcast %17 : i1 to vector<16x1xi1>
    %19 = vector.broadcast %18 : vector<16x1xi1> to vector<16x1xi1>
    %20 = arith.xori %16, %19 : vector<16x1xi1>
    %21 = arith.andi %20, %14 : vector<16x1xi1>
    %22 = vector.broadcast %10 : i32 to vector<16x1xi32>
    %23 = arith.addi %12, %22 : vector<16x1xi32>
    %24 = arith.select %21, %23, %12 : vector<16x1xi1>, vector<16x1xi32>
    %25 = vector.shape_cast %1 : vector<16x1xf32> to vector<16x1xf32>
    %26 = vector.broadcast %25 : vector<16x1xf32> to vector<16x32xf32>
    %c1_i32_10 = arith.constant 1 : i32
    %27 = vector.broadcast %c1_i32_10 : i32 to vector<16x1xi32>
    %28 = arith.cmpi sge, %24, %27 : vector<16x1xi32>
    %29 = arith.extui %28 : vector<16x1xi1> to vector<16x1xi32>
    %30 = arith.sitofp %29 : vector<16x1xi32> to vector<16x1xf32>
    %c15_i32 = arith.constant 15 : i32
    %31 = vector.broadcast %c15_i32 : i32 to vector<16x1xi32>
    %32 = arith.cmpi slt, %24, %31 : vector<16x1xi32>
    %33 = arith.extui %32 : vector<16x1xi1> to vector<16x1xi32>
    %34 = arith.sitofp %33 : vector<16x1xi32> to vector<16x1xf32>
    %c2_i32 = arith.constant 2 : i32
    %35 = vector.broadcast %c2_i32 : i32 to vector<16x1xi32>
    %36 = arith.cmpi sge, %24, %35 : vector<16x1xi32>
    %37 = arith.extui %36 : vector<16x1xi1> to vector<16x1xi32>
    %38 = arith.sitofp %37 : vector<16x1xi32> to vector<16x1xf32>
    %c14_i32 = arith.constant 14 : i32
    %39 = vector.broadcast %c14_i32 : i32 to vector<16x1xi32>
    %40 = arith.cmpi slt, %24, %39 : vector<16x1xi32>
    %41 = arith.extui %40 : vector<16x1xi1> to vector<16x1xi32>
    %42 = arith.sitofp %41 : vector<16x1xi32> to vector<16x1xf32>
    %c4_i32 = arith.constant 4 : i32
    %43 = vector.broadcast %c4_i32 : i32 to vector<16x1xi32>
    %44 = arith.cmpi sge, %24, %43 : vector<16x1xi32>
    %45 = arith.extui %44 : vector<16x1xi1> to vector<16x1xi32>
    %46 = arith.sitofp %45 : vector<16x1xi32> to vector<16x1xf32>
    %c12_i32 = arith.constant 12 : i32
    %47 = vector.broadcast %c12_i32 : i32 to vector<16x1xi32>
    %48 = arith.cmpi slt, %24, %47 : vector<16x1xi32>
    %49 = arith.extui %48 : vector<16x1xi1> to vector<16x1xi32>
    %50 = arith.sitofp %49 : vector<16x1xi32> to vector<16x1xf32>
    %51 = arith.truncf %7 : vector<16x32xf32> to vector<16x32xbf16>
    %c1_i32_11 = arith.constant 1 : i32
    %52 = tpu.dynamic_rotate %7 by %c1_i32_11 dim 0 : vector<16x32xf32>, i32 -> vector<16x32xf32>
    %53 = vector.broadcast %30 : vector<16x1xf32> to vector<16x32xf32>
    %54 = arith.mulf %52, %53 : vector<16x32xf32>
    %55 = arith.truncf %54 : vector<16x32xf32> to vector<16x32xbf16>
    %c15_i32_12 = arith.constant 15 : i32
    %56 = tpu.dynamic_rotate %7 by %c15_i32_12 dim 0 : vector<16x32xf32>, i32 -> vector<16x32xf32>
    %57 = vector.broadcast %34 : vector<16x1xf32> to vector<16x32xf32>
    %58 = arith.mulf %56, %57 : vector<16x32xf32>
    %59 = arith.truncf %58 : vector<16x32xf32> to vector<16x32xbf16>
    %c0_13 = arith.constant 0 : index
    %c0_14 = arith.constant 0 : index
    %c0_15 = arith.constant 0 : index
    %60 = vector.load %arg5[%c0_13, %c0_14, %c0_15] : memref<3x32x32xbf16, #tpu.memory_space<vmem>>, vector<1x32x32xbf16>
    %61 = vector.shape_cast %60 : vector<1x32x32xbf16> to vector<32x32xbf16>
    %cst_16 = arith.constant dense<0.000000e+00> : vector<16x32xf32>
    %62 = tpu.matmul %55, %61, %cst_16 {dimension_numbers = #tpu.dot_dimension_numbers<[1], [0], [0], [1], [0, 0, 1, 1], [], []>} : vector<16x32xbf16>, vector<32x32xbf16>, vector<16x32xf32> -> vector<16x32xf32>
    %c0_17 = arith.constant 0 : index
    %c0_18 = arith.constant 0 : index
    %c0_19 = arith.constant 0 : index
    %63 = vector.load %arg6[%c0_17, %c0_18, %c0_19] : memref<3x32x32xbf16, #tpu.memory_space<vmem>>, vector<1x32x32xbf16>
    %64 = vector.shape_cast %63 : vector<1x32x32xbf16> to vector<32x32xbf16>
    %cst_20 = arith.constant dense<0.000000e+00> : vector<16x32xf32>
    %65 = tpu.matmul %51, %64, %cst_20 {dimension_numbers = #tpu.dot_dimension_numbers<[1], [0], [0], [1], [0, 0, 1, 1], [], []>} : vector<16x32xbf16>, vector<32x32xbf16>, vector<16x32xf32> -> vector<16x32xf32>
    %66 = arith.addf %62, %65 : vector<16x32xf32>
    %c0_21 = arith.constant 0 : index
    %c0_22 = arith.constant 0 : index
    %c0_23 = arith.constant 0 : index
    %67 = vector.load %arg7[%c0_21, %c0_22, %c0_23] : memref<3x32x32xbf16, #tpu.memory_space<vmem>>, vector<1x32x32xbf16>
    %68 = vector.shape_cast %67 : vector<1x32x32xbf16> to vector<32x32xbf16>
    %cst_24 = arith.constant dense<0.000000e+00> : vector<16x32xf32>
    %69 = tpu.matmul %59, %68, %cst_24 {dimension_numbers = #tpu.dot_dimension_numbers<[1], [0], [0], [1], [0, 0, 1, 1], [], []>} : vector<16x32xbf16>, vector<32x32xbf16>, vector<16x32xf32> -> vector<16x32xf32>
    %70 = arith.addf %66, %69 : vector<16x32xf32>
    %c0_25 = arith.constant 0 : index
    %c0_26 = arith.constant 0 : index
    %c0_27 = arith.constant 0 : index
    %71 = vector.load %arg8[%c0_25, %c0_26, %c0_27] : memref<3x1x32xf32, #tpu.memory_space<vmem>>, vector<1x1x32xf32>
    %72 = vector.shape_cast %71 : vector<1x1x32xf32> to vector<1x32xf32>
    %73 = vector.broadcast %72 : vector<1x32xf32> to vector<16x32xf32>
    %74 = arith.addf %70, %73 : vector<16x32xf32>
    %cst_28 = arith.constant 0.000000e+00 : f32
    %75 = vector.broadcast %cst_28 : f32 to vector<16x32xf32>
    %76 = arith.maximumf %74, %75 : vector<16x32xf32>
    %77 = arith.addf %7, %76 : vector<16x32xf32>
    %78 = arith.mulf %77, %26 : vector<16x32xf32>
    %79 = arith.truncf %78 : vector<16x32xf32> to vector<16x32xbf16>
    %c2_i32_29 = arith.constant 2 : i32
    %80 = tpu.dynamic_rotate %78 by %c2_i32_29 dim 0 : vector<16x32xf32>, i32 -> vector<16x32xf32>
    %81 = vector.broadcast %38 : vector<16x1xf32> to vector<16x32xf32>
    %82 = arith.mulf %80, %81 : vector<16x32xf32>
    %83 = arith.truncf %82 : vector<16x32xf32> to vector<16x32xbf16>
    %c14_i32_30 = arith.constant 14 : i32
    %84 = tpu.dynamic_rotate %78 by %c14_i32_30 dim 0 : vector<16x32xf32>, i32 -> vector<16x32xf32>
    %85 = vector.broadcast %42 : vector<16x1xf32> to vector<16x32xf32>
    %86 = arith.mulf %84, %85 : vector<16x32xf32>
    %87 = arith.truncf %86 : vector<16x32xf32> to vector<16x32xbf16>
    %c1 = arith.constant 1 : index
    %c0_31 = arith.constant 0 : index
    %c0_32 = arith.constant 0 : index
    %88 = vector.load %arg5[%c1, %c0_31, %c0_32] : memref<3x32x32xbf16, #tpu.memory_space<vmem>>, vector<1x32x32xbf16>
    %89 = vector.shape_cast %88 : vector<1x32x32xbf16> to vector<32x32xbf16>
    %cst_33 = arith.constant dense<0.000000e+00> : vector<16x32xf32>
    %90 = tpu.matmul %83, %89, %cst_33 {dimension_numbers = #tpu.dot_dimension_numbers<[1], [0], [0], [1], [0, 0, 1, 1], [], []>} : vector<16x32xbf16>, vector<32x32xbf16>, vector<16x32xf32> -> vector<16x32xf32>
    %c1_34 = arith.constant 1 : index
    %c0_35 = arith.constant 0 : index
    %c0_36 = arith.constant 0 : index
    %91 = vector.load %arg6[%c1_34, %c0_35, %c0_36] : memref<3x32x32xbf16, #tpu.memory_space<vmem>>, vector<1x32x32xbf16>
    %92 = vector.shape_cast %91 : vector<1x32x32xbf16> to vector<32x32xbf16>
    %cst_37 = arith.constant dense<0.000000e+00> : vector<16x32xf32>
    %93 = tpu.matmul %79, %92, %cst_37 {dimension_numbers = #tpu.dot_dimension_numbers<[1], [0], [0], [1], [0, 0, 1, 1], [], []>} : vector<16x32xbf16>, vector<32x32xbf16>, vector<16x32xf32> -> vector<16x32xf32>
    %94 = arith.addf %90, %93 : vector<16x32xf32>
    %c1_38 = arith.constant 1 : index
    %c0_39 = arith.constant 0 : index
    %c0_40 = arith.constant 0 : index
    %95 = vector.load %arg7[%c1_38, %c0_39, %c0_40] : memref<3x32x32xbf16, #tpu.memory_space<vmem>>, vector<1x32x32xbf16>
    %96 = vector.shape_cast %95 : vector<1x32x32xbf16> to vector<32x32xbf16>
    %cst_41 = arith.constant dense<0.000000e+00> : vector<16x32xf32>
    %97 = tpu.matmul %87, %96, %cst_41 {dimension_numbers = #tpu.dot_dimension_numbers<[1], [0], [0], [1], [0, 0, 1, 1], [], []>} : vector<16x32xbf16>, vector<32x32xbf16>, vector<16x32xf32> -> vector<16x32xf32>
    %98 = arith.addf %94, %97 : vector<16x32xf32>
    %c1_42 = arith.constant 1 : index
    %c0_43 = arith.constant 0 : index
    %c0_44 = arith.constant 0 : index
    %99 = vector.load %arg8[%c1_42, %c0_43, %c0_44] : memref<3x1x32xf32, #tpu.memory_space<vmem>>, vector<1x1x32xf32>
    %100 = vector.shape_cast %99 : vector<1x1x32xf32> to vector<1x32xf32>
    %101 = vector.broadcast %100 : vector<1x32xf32> to vector<16x32xf32>
    %102 = arith.addf %98, %101 : vector<16x32xf32>
    %cst_45 = arith.constant 0.000000e+00 : f32
    %103 = vector.broadcast %cst_45 : f32 to vector<16x32xf32>
    %104 = arith.maximumf %102, %103 : vector<16x32xf32>
    %105 = arith.addf %78, %104 : vector<16x32xf32>
    %106 = arith.mulf %105, %26 : vector<16x32xf32>
    %107 = arith.truncf %106 : vector<16x32xf32> to vector<16x32xbf16>
    %c4_i32_46 = arith.constant 4 : i32
    %108 = tpu.dynamic_rotate %106 by %c4_i32_46 dim 0 : vector<16x32xf32>, i32 -> vector<16x32xf32>
    %109 = vector.broadcast %46 : vector<16x1xf32> to vector<16x32xf32>
    %110 = arith.mulf %108, %109 : vector<16x32xf32>
    %111 = arith.truncf %110 : vector<16x32xf32> to vector<16x32xbf16>
    %c12_i32_47 = arith.constant 12 : i32
    %112 = tpu.dynamic_rotate %106 by %c12_i32_47 dim 0 : vector<16x32xf32>, i32 -> vector<16x32xf32>
    %113 = vector.broadcast %50 : vector<16x1xf32> to vector<16x32xf32>
    %114 = arith.mulf %112, %113 : vector<16x32xf32>
    %115 = arith.truncf %114 : vector<16x32xf32> to vector<16x32xbf16>
    %c2 = arith.constant 2 : index
    %c0_48 = arith.constant 0 : index
    %c0_49 = arith.constant 0 : index
    %116 = vector.load %arg5[%c2, %c0_48, %c0_49] : memref<3x32x32xbf16, #tpu.memory_space<vmem>>, vector<1x32x32xbf16>
    %117 = vector.shape_cast %116 : vector<1x32x32xbf16> to vector<32x32xbf16>
    %cst_50 = arith.constant dense<0.000000e+00> : vector<16x32xf32>
    %118 = tpu.matmul %111, %117, %cst_50 {dimension_numbers = #tpu.dot_dimension_numbers<[1], [0], [0], [1], [0, 0, 1, 1], [], []>} : vector<16x32xbf16>, vector<32x32xbf16>, vector<16x32xf32> -> vector<16x32xf32>
    %c2_51 = arith.constant 2 : index
    %c0_52 = arith.constant 0 : index
    %c0_53 = arith.constant 0 : index
    %119 = vector.load %arg6[%c2_51, %c0_52, %c0_53] : memref<3x32x32xbf16, #tpu.memory_space<vmem>>, vector<1x32x32xbf16>
    %120 = vector.shape_cast %119 : vector<1x32x32xbf16> to vector<32x32xbf16>
    %cst_54 = arith.constant dense<0.000000e+00> : vector<16x32xf32>
    %121 = tpu.matmul %107, %120, %cst_54 {dimension_numbers = #tpu.dot_dimension_numbers<[1], [0], [0], [1], [0, 0, 1, 1], [], []>} : vector<16x32xbf16>, vector<32x32xbf16>, vector<16x32xf32> -> vector<16x32xf32>
    %122 = arith.addf %118, %121 : vector<16x32xf32>
    %c2_55 = arith.constant 2 : index
    %c0_56 = arith.constant 0 : index
    %c0_57 = arith.constant 0 : index
    %123 = vector.load %arg7[%c2_55, %c0_56, %c0_57] : memref<3x32x32xbf16, #tpu.memory_space<vmem>>, vector<1x32x32xbf16>
    %124 = vector.shape_cast %123 : vector<1x32x32xbf16> to vector<32x32xbf16>
    %cst_58 = arith.constant dense<0.000000e+00> : vector<16x32xf32>
    %125 = tpu.matmul %115, %124, %cst_58 {dimension_numbers = #tpu.dot_dimension_numbers<[1], [0], [0], [1], [0, 0, 1, 1], [], []>} : vector<16x32xbf16>, vector<32x32xbf16>, vector<16x32xf32> -> vector<16x32xf32>
    %126 = arith.addf %122, %125 : vector<16x32xf32>
    %c2_59 = arith.constant 2 : index
    %c0_60 = arith.constant 0 : index
    %c0_61 = arith.constant 0 : index
    %127 = vector.load %arg8[%c2_59, %c0_60, %c0_61] : memref<3x1x32xf32, #tpu.memory_space<vmem>>, vector<1x1x32xf32>
    %128 = vector.shape_cast %127 : vector<1x1x32xf32> to vector<1x32xf32>
    %129 = vector.broadcast %128 : vector<1x32xf32> to vector<16x32xf32>
    %130 = arith.addf %126, %129 : vector<16x32xf32>
    %cst_62 = arith.constant 0.000000e+00 : f32
    %131 = vector.broadcast %cst_62 : f32 to vector<16x32xf32>
    %132 = arith.maximumf %130, %131 : vector<16x32xf32>
    %133 = arith.addf %106, %132 : vector<16x32xf32>
    %134 = arith.mulf %133, %26 : vector<16x32xf32>
    %135 = arith.truncf %134 : vector<16x32xf32> to vector<16x32xbf16>
    %c0_63 = arith.constant 0 : index
    %c0_64 = arith.constant 0 : index
    %136 = vector.load %arg9[%c0_63, %c0_64] : memref<32x128xbf16, #tpu.memory_space<vmem>>, vector<32x128xbf16>
    %cst_65 = arith.constant dense<0.000000e+00> : vector<16x128xf32>
    %137 = tpu.matmul %135, %136, %cst_65 {dimension_numbers = #tpu.dot_dimension_numbers<[1], [0], [0], [1], [0, 0, 1, 1], [], []>} : vector<16x32xbf16>, vector<32x128xbf16>, vector<16x128xf32> -> vector<16x128xf32>
    %c0_66 = arith.constant 0 : index
    %c0_67 = arith.constant 0 : index
    %138 = vector.load %arg10[%c0_66, %c0_67] : memref<1x128xf32, #tpu.memory_space<vmem>>, vector<1x128xf32>
    %139 = vector.broadcast %138 : vector<1x128xf32> to vector<16x128xf32>
    %140 = arith.addf %137, %139 : vector<16x128xf32>
    %141 = vector.broadcast %1 : vector<16x1xf32> to vector<16x128xf32>
    %142 = arith.mulf %140, %141 : vector<16x128xf32>
    %143 = arith.truncf %142 : vector<16x128xf32> to vector<16x128xbf16>
    %c0_68 = arith.constant 0 : index
    %c0_69 = arith.constant 0 : index
    %144 = vector.load %arg11[%c0_68, %c0_69] : memref<16x128xbf16, #tpu.memory_space<vmem>>, vector<16x128xbf16>
    tpu.vector_store %arg11[%c0_68, %c0_69], %143 {strides = array<i32>} : memref<16x128xbf16, #tpu.memory_space<vmem>>, vector<16x128xbf16>,
    return
  }
  func.func @transform_0(%arg0: i32) -> (i32, i32) {
    %c0_i32 = arith.constant 0 : i32
    %c0_i32_0 = arith.constant 0 : i32
    return %arg0, %c0_i32 : i32, i32
  }
  func.func @transform_1(%arg0: i32) -> (i32, i32) {
    %c0_i32 = arith.constant 0 : i32
    %c0_i32_0 = arith.constant 0 : i32
    return %arg0, %c0_i32 : i32, i32
  }
  func.func @transform_2(%arg0: i32) -> (i32, i32) {
    %c0_i32 = arith.constant 0 : i32
    %c0_i32_0 = arith.constant 0 : i32
    %c0_i32_1 = arith.constant 0 : i32
    return %c0_i32, %c0_i32_0 : i32, i32
  }
  func.func @transform_3(%arg0: i32) -> (i32, i32) {
    %c0_i32 = arith.constant 0 : i32
    %c0_i32_0 = arith.constant 0 : i32
    %c0_i32_1 = arith.constant 0 : i32
    return %c0_i32, %c0_i32_0 : i32, i32
  }
  func.func @transform_4(%arg0: i32) -> (i32, i32, i32) {
    %c0_i32 = arith.constant 0 : i32
    %c0_i32_0 = arith.constant 0 : i32
    %c0_i32_1 = arith.constant 0 : i32
    %c0_i32_2 = arith.constant 0 : i32
    return %c0_i32, %c0_i32_0, %c0_i32_1 : i32, i32, i32
  }
  func.func @transform_5(%arg0: i32) -> (i32, i32, i32) {
    %c0_i32 = arith.constant 0 : i32
    %c0_i32_0 = arith.constant 0 : i32
    %c0_i32_1 = arith.constant 0 : i32
    %c0_i32_2 = arith.constant 0 : i32
    return %c0_i32, %c0_i32_0, %c0_i32_1 : i32, i32, i32
  }
  func.func @transform_6(%arg0: i32) -> (i32, i32, i32) {
    %c0_i32 = arith.constant 0 : i32
    %c0_i32_0 = arith.constant 0 : i32
    %c0_i32_1 = arith.constant 0 : i32
    %c0_i32_2 = arith.constant 0 : i32
    return %c0_i32, %c0_i32_0, %c0_i32_1 : i32, i32, i32
  }
  func.func @transform_7(%arg0: i32) -> (i32, i32, i32) {
    %c0_i32 = arith.constant 0 : i32
    %c0_i32_0 = arith.constant 0 : i32
    %c0_i32_1 = arith.constant 0 : i32
    %c0_i32_2 = arith.constant 0 : i32
    return %c0_i32, %c0_i32_0, %c0_i32_1 : i32, i32, i32
  }
  func.func @transform_8(%arg0: i32) -> (i32, i32) {
    %c0_i32 = arith.constant 0 : i32
    %c0_i32_0 = arith.constant 0 : i32
    %c0_i32_1 = arith.constant 0 : i32
    return %c0_i32, %c0_i32_0 : i32, i32
  }
  func.func @transform_9(%arg0: i32) -> (i32, i32) {
    %c0_i32 = arith.constant 0 : i32
    %c0_i32_0 = arith.constant 0 : i32
    %c0_i32_1 = arith.constant 0 : i32
    return %c0_i32, %c0_i32_0 : i32, i32
  }
  func.func @transform_10(%arg0: i32) -> (i32, i32) {
    %c0_i32 = arith.constant 0 : i32
    %c0_i32_0 = arith.constant 0 : i32
    return %arg0, %c0_i32 : i32, i32
  }
}

</mosaic_0001>

<bundles_post_ra>
// kernel: tpu_custom_call.1
= control target key start
LH: loop header
LB: loop body
LE: loop exit
PB: predicated region body
PF: predicated region fallthrough
CT: control target
= control target key end

     0   :  { %15 = vsyncpa [#allocation3], 0  ;;  %s1692_s0 = inlined_call_operand.vmem [shape: f32[32,4], index: 0, kind: input, shape index: {}]   ;;  %s1693_s1 = inlined_call_operand.vmem [shape: f32[32,1], index: 1, kind: input, shape index: {}]   ;;  %s1694_s2 = inlined_call_operand.vmem [shape: bf16[4,32], index: 2, kind: input, shape index: {}]   ;;  %s1695_s3 = inlined_call_operand.vmem [shape: f32[1,32], index: 3, kind: input, shape index: {}]   ;;  %s1696_s4 = inlined_call_operand.vmem [shape: bf16[3,32,32], index: 4, kind: input, shape index: {}]   ;;  %s1697_s5 = inlined_call_operand.hbm [shape: bf16[3,32,32], index: 5, kind: input, shape index: {}]   ;;  %s1698_s6 = inlined_call_operand.hbm [shape: bf16[3,32,32], index: 6, kind: input, shape index: {}]   ;;  %s1699_s7 = inlined_call_operand.vmem [shape: f32[3,1,32], index: 7, kind: input, shape index: {}]   ;;  %s1700_s8 = inlined_call_operand.vmem [shape: bf16[32,128], index: 8, kind: input, shape index: {}]   ;;  %s1701_s9 = inlined_call_operand.vmem [shape: f32[1,128], index: 9, kind: input, shape index: {}]   ;;  %s1702_s10 = inlined_call_operand.hbm [shape: bf16[32,128], index: 10, kind: output, shape index: {}]  }
   0x1   :  { %16 = vsyncpa [#allocation6], 0 }
   0x2   :  { %17 = vsyncpa [#allocation4], 0 }
   0x3   :  { %19 = vsyncpa [#allocation4 + $0x1], 0  ;;  %s1491_s13 = smov 0   ;;  %s1493_s14 = smov 0  }
   0x4   :  { %s1495_s15 = smov 0   ;;  %s1497_s16 = smov 0  }
   0x5 LB: > { %s1512_s17 = sadd.s32 4294967295, %s1426_s16   ;;  %s1073_s18 = sadd.s32 4294967294, %s1426_s16   ;;  %s1426_s16 = sphi %s1497_s16, %s1711_s16   ;;  %s1422_s15 = sphi %s1495_s15, %s1710_s15   ;;  %s1418_s14 = sphi %s1493_s14, %s1709_s14   ;;  %s1414_s13 = sphi %s1491_s13, %s1708_s13  }
   0x6   : > { %s1516_s19 = sadd.s32 1, %s1426_s16   ;;  %s252_s20 = sadd.s32 1, %s1422_s15 }
   0x7   : > { %s249_s21 = ssub.s32 %s1426_s16, %s1516_s19  ;;  %p262_p0 = scmp.ne.s32.totalorder %s1422_s15, %s1418_s14 }
   0x8   : > { %p250_p1 = scmp.eq.s32.totalorder %s249_s21, 0  ;;  %p263_p2 = scmp.eq.s32.totalorder %s1512_s17, 1 }
   0x9   : > { %p268_p3 = scmp.ne.s32.totalorder %s1418_s14, %s1414_s13  ;;  %p269_p4 = scmp.eq.s32.totalorder %s1073_s18, 1 }
   0xa   : > { %s1527_s22 = scalar_select %p250_p1, %s1422_s15, %s252_s20  }
   0xb   : > { %p1529_p5 = por %p263_p2, %p262_p0  ;;  %p1533_p6 = por %p269_p4, %p268_p3 }
   0xc   : > { %1703 = sst [smem:[#allocation11_spill]] %s1527_s22  ;;  %p1074_p7 = scmp.ge.s32.totalorder %s1426_s16, 1 }
   0xd   : > { %p276_p8 = scmp.lt.s32.totalorder %s1426_s16, 3  ;;  %p1245_p9 = scmp.eq.s32.totalorder %s1512_s17, 0 }
   0xe   : > { %s296_s28 = sshll.u32 %s1697_s5, 4  ;;  %s1428_s29 = smov [#allocation2]   ;;  %s297_s28 = int_to_ptr.hbm [resolvable:$true] %s296_s28 }
   0xf   : > { %p1540_p10 = pnand %p1074_p7, %p276_p8  ;;  %s298_s30 = sshll.u32 %s1428_s29, 4  ;;  %s299_s30 = int_to_ptr.vmem [resolvable:$true] %s298_s30 }
  0x10   : > { %s310_s18 = sshll.u32 %s1698_s6, 4  ;;  %s1429_s20 = smov 64   ;;  %s311_s18 = int_to_ptr.hbm [resolvable:$true] %s310_s18 }
  0x11   : > { %p1234_p11 = pneg %p1540_p10  ;;  %s1430_s21 = smov 4  }
  0x12   : > { %s1431_s22 = smov [#allocation5]   ;;  %355 = sbr.rel (%p1540_p10) target bundleno = 793 (0x319), region = 60 }
  0x13   : > { %p1235_p12 = pnand %p1245_p9, %p1234_p11  ;;  %s312_s26 = sshll.u32 %s1431_s22, 4  ;;  %s313_s26 = int_to_ptr.vmem [resolvable:$true] %s312_s26 }
  0x15   : > { %1237 = dma.hbm_to_vmem [thread:$0]  (!%p1235_p12), %s297_s28, 768, %s299_s30, [#allocation3], %s1429_s20, %s1429_s20, %s1430_s21  }
  0x16   : > { %1240 = dma.hbm_to_vmem [thread:$0]  (!%p1235_p12), %s311_s18, 768, %s313_s26, [#allocation6], %s1429_s20, %s1429_s20, %s1430_s21  }
  0x17   : > { %1401 = dma.done.wait (%p1245_p9), [#allocation3], 768  }
  0x18   : > { %1403 = vsyncadd (%p1245_p9), [#allocation3], 4294966528 }
  0x19   : > { %1405 = dma.done.wait (%p1245_p9), [#allocation6], 768  }
  0x1a   : > { %1407 = vsyncadd (%p1245_p9), [#allocation6], 4294966528  ;;  %s1082_s27 = sshll.u32 %s1512_s17, 1  ;;  %vm432_vm0 = vcmask 1041408   ;;  %v423_v0 = vld [vmem:[%s1694_s2] sm:$0x3]  ;;  %v450_v13 = vlaneseq }
  0x1b   : > { %p405_p13 = scmp.lt.s32.totalorder %s1082_s27, 3  ;;  %v434_v3 = vsel %vm432_vm0, %v423_v0, 0  ;;  %vm428_vm1 = vcmask 31744   ;;  %v1201_v5 = vld [vmem:[#allocation2 + $0x8] sm:$0xff]  ;;  %v1200_v6 = vld [vmem:[#allocation2] sm:$0xff]  ;;  %v1203_v8 = vld [vmem:[#allocation5 + $0x8] sm:$0xff] }
  0x1c   : > { %443 = vmatpush.bf16.msra.mxu0 %v434_v3  ;;  %570 = vmatpush.bf16.msra.mxu1 %v1201_v5  ;;  %v1199_v7 = vld [vmem:[%s1696_s4 + $0x8] sm:$0xff]  ;;  %v1198_v9 = vld [vmem:[%s1696_s4] sm:$0xff]  ;;  %v1202_v10 = vld [vmem:[#allocation5] sm:$0xff]  ;;  %v1432_v12 = vmov 0   ;;  %v1580_v15 = vshrl.u32 %v450_v13, 7  ;;  %vm560_vm4 = vcmask 261120  }
  0x1d   : > { %s1713_s27 = smov (!%p405_p13, %s1082_s27), 3  ;;  %599 = vmatpush.bf16.msra.mxu2 %v1199_v7  ;;  %632 = vmatpush.bf16.msra.mxu3 %v1203_v8  ;;  %v1291_v18 = vld [vmem:[%s1695_s3] ss:$0 sm:$0xff]  ;;  %v1433_v25 = vmov 0.0   ;;  %v1207_v40 = vld [vmem:[#allocation2 + $0x18] sm:$0xff]  ;;  %v1206_v41 = vld [vmem:[#allocation2 + $0x10] sm:$0xff] }
  0x1e   : > { %s1083_s22 = sshll.u32 %s1713_s27, 3  ;;  %1290 = vset.pattern.permute.xlu0 %v1432_v12  ;;  %v452_v16 = vadd.s32 8, %v1580_v15  ;;  %v1587_v19 = vand.u32 15, %v1580_v15  ;;  %vm526_vm5 = vcmp.lt.s32.totalorder %v1580_v15, 1  ;;  %vm534_vm6 = vcmp.lt.s32.totalorder %v1580_v15, 7  ;;  %v1209_v42 = vld [vmem:[#allocation5 + $0x18] sm:$0xff] }
  0x1f   : > { %s408_s29 = scalar_lea.vmem %s1692_s0, %s1083_s22  ;;  %s414_s25 = scalar_lea.vmem %s1693_s1, %s1083_s22  ;;  %v1205_v43 = vld [vmem:[%s1696_s4 + $0x18] sm:$0xff]  ;;  %v1208_v44 = vld [vmem:[#allocation5 + $0x10] sm:$0xff]  ;;  %v1204_v45 = vld [vmem:[%s1696_s4 + $0x10] sm:$0xff]  ;;  %vm657_vm9 = vcmp.lt.s32.totalorder %v1580_v15, 2  ;;  %vm665_vm10 = vcmp.lt.s32.totalorder %v1580_v15, 6  ;;  %vm791_vm13 = vcmp.lt.s32.totalorder %v1580_v15, 4 }
  0x20   : > { %v418_v1 = vld [vmem:[%s408_s29] sm:$0xff]  ;;  %v419_v2 = vld [vmem:[%s408_s29 + $0x8] sm:$0xff]  ;;  %571 = vmatpush.bf16.msra.mxu1 %v1200_v6  ;;  %v1589_v20 = vand.u32 15, %v452_v16  ;;  %vm487_vm2 = vcmp.ge.s32.totalorder %v1587_v19, 1  ;;  %702 = vmatpush.bf16.msrb.mxu0 %v1207_v40  ;;  %vm499_vm7 = vcmp.ge.s32.totalorder %v1587_v19, 2  ;;  %vm511_vm11 = vcmp.ge.s32.totalorder %v1587_v19, 4 }
  0x21   : > { %v422_v4 = vpack.c.bf16 %v419_v2, %v418_v1  ;;  %600 = vmatpush.bf16.msra.mxu2 %v1198_v9  ;;  %633 = vmatpush.bf16.msra.mxu3 %v1202_v10  ;;  %v420_v11 = vld [vmem:[%s414_s25] sm:$0xff]  ;;  %v421_v14 = vld [vmem:[%s414_s25 + $0x8] sm:$0xff]  ;;  %v1087_v26 = vsel %vm487_vm2, 1.0, %v1433_v25  ;;  %v1089_v3 = vsel %vm499_vm7, 1.0, %v1433_v25  ;;  %s401_s21 = sand.u32 1, %s1418_s14   ;;  %s1218_s28 = sshll.u32 %s1512_s17, 3 }
  0x22   : > { %479 = vperm.xlu0 %1290, %v420_v11   ;;  %vm494_vm3 = vcmp.lt.s32.totalorder %v1589_v20, 15  ;;  %v1292_v50 = vld [vmem:[%s1699_s7] ss:$0 sm:$0xff]  ;;  %vm506_vm8 = vcmp.lt.s32.totalorder %v1589_v20, 14  ;;  %vm518_vm12 = vcmp.lt.s32.totalorder %v1589_v20, 12  ;;  %v1217_v15 = vld [vmem:[%s1700_s8 + $0x8] sm:$0xff]  ;;  %s973_s30 = scalar_lea.hbm %s1702_s10, %s1218_s28 }
  0x23   : > { %1086 = vmatmul.msk.bf16.vlgmr.msra.gmra.mxu0 %vm428_vm1, %v422_v4  ;;  %v1088_v27 = vsel %vm494_vm3, 1.0, %v1433_v25  ;;  %v1090_v5 = vsel %vm506_vm8, 1.0, %v1433_v25  ;;  %v1216_v20 = vld [vmem:[%s1700_s8] sm:$0xff]  ;;  %s1081_s25 = sshll.u32 %s401_s21, 3  ;;  %s976_s18 = sshll.u32 %s973_s30, 4  ;;  %s977_s18 = int_to_ptr.hbm [resolvable:$true] %s976_s18 }
  0x24   : > { %703 = vmatpush.bf16.msrb.mxu0 %v1206_v41  ;;  %731 = vmatpush.bf16.msrb.mxu1 %v1205_v43  ;;  %s403_s11 = scalar_lea.vmem [#allocation7], %s1081_s25  ;;  %s962_s17 = scalar_lea.sflag [#allocation4], %s401_s21 }
  0x25   : > { %765 = vmatpush.bf16.msrb.mxu2 %v1209_v42  ;;  %s974_s12 = sshll.u32 %s403_s11, 4  ;;  %s1370_s20 = sshra.s32 %s977_s18, 4  ;;  %s975_s12 = int_to_ptr.vmem [resolvable:$true] %s974_s12  ;;  %s1371_s20 = int_to_ptr.hbm [resolvable:$true] %s1370_s20 }
  0x26   : > { %s1372_s26 = scalar_lea.hbm %s1371_s20, 8  ;;  %s1376_s28 = scalar_lea.hbm %s1702_s10, 16 }
  0x27   : > { %p1373_p0 = scmp.ne.s32.totalorder %s1371_s20, %s1372_s26  ;;  %p1377_p3 = scmp.lt.s32.totalorder %s1371_s20, %s1702_s10 }
  0x28   : > { %732 = vmatpush.bf16.msrb.mxu1 %v1204_v45  ;;  %p1378_p4 = scmp.lt.s32.totalorder %s1376_s28, %s1372_s26 }
  0x29   : > { %766 = vmatpush.bf16.msrb.mxu2 %v1208_v44  ;;  %p1374_p1 = pnand %p1373_p0, %p1529_p5 }
  0x2a   : > { %484 = vperm.xlu0 %1290, %v421_v14   ;;  %p1379_p7 = por %p1378_p4, %p1377_p3 }
  0x2b   : > { %p1375_p2 = pneg %p1374_p1 }
  0x2d   : > { %p1380_p8 = pnand %p1379_p7, %p1375_p2 }
  0x94   : > { %v1609_v53 = vpop.permute.xlu0 %479 }
  0x9c   : > { %v1614_v1 = vpop.permute.xlu0 %484 }
  0xa0   : > { %v445_v17 = vpop.f32.mrf.mxu0 }
  0xa1   : > { %v446_v21 = vadd.f32 %v1291_v18, %v445_v17 }
  0xa3   : > { %v524_v24 = vrot.slane %v446_v21, 7  ;;  %v532_v28 = vrot.slane %v446_v21, 1 }
  0xa8   : > { %v447_v22 = vpop.f32.mrf.mxu0 }
  0xa9   : > { %v448_v23 = vadd.f32 %v1291_v18, %v447_v22  ;;  %v1212_v22 = vld [vmem:[#allocation2 + $0x20] sm:$0xff] }
  0xab   : > { %v525_v29 = vrot.slane %v448_v23, 7  ;;  %v533_v30 = vrot.slane %v448_v23, 1  ;;  %v523_v31 = vpack.c.bf16 %v448_v23, %v446_v21 }
  0xad   : > { %1101 = vmatmul.msk.bf16.vlgmr.msra.gmra.mxu1 %vm560_vm4, %v523_v31  ;;  %v528_v32 = vsel %vm526_vm5, %v525_v29, %v524_v24  ;;  %v536_v33 = vsel %vm534_vm6, %v533_v30, %v532_v28  ;;  %v527_v36 = vsel %vm526_vm5, %v524_v24, %v525_v29  ;;  %v535_v37 = vsel %vm534_vm6, %v532_v28, %v533_v30  ;;  %v1215_v24 = vld [vmem:[#allocation5 + $0x28] sm:$0xff]  ;;  %v1293_v31 = vld [vmem:[%s1699_s7 + $0x1] ss:$0 sm:$0xff] }
  0xae   : > { %v529_v34 = vmul.f32 %v1087_v26, %v528_v32  ;;  %v538_v35 = vmul.f32 %v1088_v27, %v536_v33  ;;  %894 = vmatpush.bf16.msra.mxu1 %v1215_v24  ;;  %v1210_v26 = vld [vmem:[%s1696_s4 + $0x20] sm:$0xff]  ;;  %v1214_v27 = vld [vmem:[#allocation5 + $0x20] sm:$0xff] }
  0xb0   : > { %v531_v38 = vpack.c.bf16 %v527_v36, %v529_v34  ;;  %v539_v39 = vpack.c.bf16 %v538_v35, %v535_v37 }
  0xb2   : > { %1110 = vmatmul.msk.bf16.vlgmr.msra.gmra.mxu2 %vm560_vm4, %v531_v38  ;;  %1119 = vmatmul.msk.bf16.vlgmr.msra.gmra.mxu3 %vm560_vm4, %v539_v39 }
  0xb3   : > { %895 = vmatpush.bf16.msra.mxu1 %v1214_v27  ;;  %947 = vmatpush.bf16.msra.mxu2 %v1217_v15 }
  0xb7   : > { %948 = vmatpush.bf16.msra.mxu2 %v1216_v20 }
 0x12a   : > { %v573_v46 = vpop.f32.mrf.mxu1 }
 0x132   : > { %v575_v54 = vpop.f32.mrf.mxu1 }
 0x135   : > { %v602_v47 = vpop.f32.mrf.mxu2  ;;  %v635_v48 = vpop.f32.mrf.mxu3 }
 0x136   : > { %v603_v49 = vadd.f32 %v602_v47, %v573_v46  ;;  %v1091_v47 = vsel %vm511_vm11, 1.0, %v1433_v25 }
 0x138   : > { %v640_v51 = vadd.f32 %v635_v48, %v603_v49 }
 0x13a   : > { %v646_v52 = vadd.f32 %v1292_v50, %v640_v51  ;;  %v1092_v51 = vsel %vm518_vm12, 1.0, %v1433_v25 }
 0x13c   : > { %v648_v55 = vmax.f32 %v646_v52, 0.0 }
 0x13d   : > { %v604_v56 = vpop.f32.mrf.mxu2  ;;  %v637_v58 = vpop.f32.mrf.mxu3 }
 0x13e   : > { %v605_v57 = vadd.f32 %v604_v56, %v575_v54  ;;  %v650_v60 = vadd.f32 %v648_v55, %v446_v21  ;;  %v1213_v21 = vld [vmem:[#allocation2 + $0x28] sm:$0xff] }
 0x13f   : > { %831 = vmatpush.bf16.msrb.mxu3 %v1213_v21 }
 0x140   : > { %v641_v59 = vadd.f32 %v637_v58, %v605_v57  ;;  %v652_v63 = vmul.f32 %v650_v60, %v1609_v53 }
 0x142   : > { %v647_v61 = vadd.f32 %v1292_v50, %v641_v59  ;;  %v655_v4 = vrot.slane %v652_v63, 6  ;;  %v663_v9 = vrot.slane %v652_v63, 2 }
 0x143   : > { %832 = vmatpush.bf16.msrb.mxu3 %v1212_v22 }
 0x144   : > { %v649_v62 = vmax.f32 %v647_v61, 0.0 }
 0x146   : > { %v651_v0 = vadd.f32 %v649_v62, %v448_v23  ;;  %v1211_v23 = vld [vmem:[%s1696_s4 + $0x28] sm:$0xff]  ;;  %v1294_v62 = vld [vmem:[%s1699_s7 + $0x2] ss:$0 sm:$0xff] }
 0x147   : > { %860 = vmatpush.bf16.msra.mxu0 %v1211_v23 }
 0x148   : > { %v653_v2 = vmul.f32 %v651_v0, %v1614_v1 }
 0x14a   : > { %v656_v6 = vrot.slane %v653_v2, 6  ;;  %v664_v7 = vrot.slane %v653_v2, 2  ;;  %v654_v8 = vpack.c.bf16 %v653_v2, %v652_v63 }
 0x14b   : > { %861 = vmatpush.bf16.msra.mxu0 %v1210_v26 }
 0x14c   : > { %1132 = vmatmul.msk.bf16.vlgmr.msrb.gmra.mxu0 %vm560_vm4, %v654_v8  ;;  %v659_v10 = vsel %vm657_vm9, %v656_v6, %v655_v4  ;;  %v667_v11 = vsel %vm665_vm10, %v664_v7, %v663_v9  ;;  %v658_v14 = vsel %vm657_vm9, %v655_v4, %v656_v6  ;;  %v666_v16 = vsel %vm665_vm10, %v663_v9, %v664_v7 }
 0x14d   : > { %v660_v12 = vmul.f32 %v1089_v3, %v659_v10  ;;  %v669_v13 = vmul.f32 %v1090_v5, %v667_v11 }
 0x14f   : > { %v662_v17 = vpack.c.bf16 %v658_v14, %v660_v12  ;;  %v670_v18 = vpack.c.bf16 %v669_v13, %v666_v16  ;;  %v1295_v16 = vld [vmem:[%s1701_s9] ss:$0 sm:$0xff] }
 0x151   : > { %1141 = vmatmul.msk.bf16.vlgmr.msrb.gmra.mxu1 %vm560_vm4, %v662_v17  ;;  %1150 = vmatmul.msk.bf16.vlgmr.msrb.gmra.mxu2 %vm560_vm4, %v670_v18 }
 0x1c9   : > { %v705_v29 = vpop.f32.mrf.mxu0 }
 0x1ce   : > { %v734_v28 = vpop.f32.mrf.mxu1 }
 0x1cf   : > { %v735_v30 = vadd.f32 %v734_v28, %v705_v29 }
 0x1d1   : > { %v707_v36 = vpop.f32.mrf.mxu0 }
 0x1d4   : > { %v768_v32 = vpop.f32.mrf.mxu2 }
 0x1d5   : > { %v773_v33 = vadd.f32 %v768_v32, %v735_v30 }
 0x1d6   : > { %v736_v35 = vpop.f32.mrf.mxu1 }
 0x1d7   : > { %v780_v34 = vadd.f32 %v1293_v31, %v773_v33  ;;  %v737_v38 = vadd.f32 %v736_v35, %v707_v36 }
 0x1d9   : > { %v782_v37 = vmax.f32 %v780_v34, 0.0 }
 0x1db   : > { %v784_v41 = vadd.f32 %v782_v37, %v652_v63 }
 0x1dc   : > { %v770_v39 = vpop.f32.mrf.mxu2 }
 0x1dd   : > { %v774_v40 = vadd.f32 %v770_v39, %v737_v38  ;;  %v786_v44 = vmul.f32 %v784_v41, %v1609_v53 }
 0x1df   : > { %v781_v42 = vadd.f32 %v1293_v31, %v774_v40  ;;  %v789_v48 = vrot.slane %v786_v44, 4 }
 0x1e1   : > { %v783_v43 = vmax.f32 %v781_v42, 0.0 }
 0x1e3   : > { %v785_v45 = vadd.f32 %v783_v43, %v653_v2 }
 0x1e5   : > { %v787_v46 = vmul.f32 %v785_v45, %v1614_v1 }
 0x1e7   : > { %v790_v49 = vrot.slane %v787_v46, 4  ;;  %v788_v50 = vpack.c.bf16 %v787_v46, %v786_v44 }
 0x1e9   : > { %1164 = vmatmul.msk.bf16.vlgmr.msrb.gmra.mxu3 %vm560_vm4, %v788_v50  ;;  %v793_v52 = vsel %vm791_vm13, %v790_v49, %v789_v48  ;;  %v792_v56 = vsel %vm791_vm13, %v789_v48, %v790_v49 }
 0x1ea   : > { %v794_v54 = vmul.f32 %v1091_v47, %v793_v52  ;;  %v798_v55 = vmul.f32 %v1092_v51, %v793_v52 }
 0x1ec   : > { %v796_v19 = vpack.c.bf16 %v792_v56, %v794_v54  ;;  %v799_v57 = vpack.c.bf16 %v798_v55, %v792_v56 }
 0x1ee   : > { %1173 = vmatmul.msk.bf16.vlgmr.msra.gmra.mxu0 %vm560_vm4, %v796_v19  ;;  %1182 = vmatmul.msk.bf16.vlgmr.msra.gmra.mxu1 %vm560_vm4, %v799_v57 }
 0x26b   : > { %v863_v25 = vpop.f32.mrf.mxu0  ;;  %v897_v58 = vpop.f32.mrf.mxu1 }
 0x26c   : > { %v834_v59 = vpop.f32.mrf.mxu3 }
 0x26d   : > { %v864_v60 = vadd.f32 %v863_v25, %v834_v59 }
 0x26f   : > { %v902_v61 = vadd.f32 %v897_v58, %v864_v60 }
 0x271   : > { %v909_v63 = vadd.f32 %v1294_v62, %v902_v61 }
 0x273   : > { %v865_v0 = vpop.f32.mrf.mxu0  ;;  %v899_v4 = vpop.f32.mrf.mxu1  ;;  %v911_v5 = vmax.f32 %v909_v63, 0.0 }
 0x274   : > { %v836_v2 = vpop.f32.mrf.mxu3 }
 0x275   : > { %v866_v3 = vadd.f32 %v865_v0, %v836_v2  ;;  %v913_v8 = vadd.f32 %v911_v5, %v786_v44 }
 0x277   : > { %v903_v6 = vadd.f32 %v899_v4, %v866_v3  ;;  %v915_v11 = vmul.f32 %v913_v8, %v1609_v53 }
 0x279   : > { %v910_v7 = vadd.f32 %v1294_v62, %v903_v6 }
 0x27b   : > { %v912_v9 = vmax.f32 %v910_v7, 0.0 }
 0x27d   : > { %v914_v10 = vadd.f32 %v912_v9, %v787_v46 }
 0x27f   : > { %v916_v12 = vmul.f32 %v914_v10, %v1614_v1 }
 0x281   : > { %v917_v13 = vpack.c.bf16 %v916_v12, %v915_v11 }
 0x283   : > { %1192 = vmatmul.msk.bf16.vlgmr.msra.gmra.mxu2 %vm560_vm4, %v917_v13 }
 0x306   : > { %v950_v14 = vpop.f32.mrf.mxu2 }
 0x307   : > { %v951_v17 = vadd.f32 %v1295_v16, %v950_v14 }
 0x309   : > { %v955_v22 = vmul.f32 %v951_v17, %v1609_v53 }
 0x30e   : > { %v952_v18 = vpop.f32.mrf.mxu2 }
 0x30f   : > { %v953_v21 = vadd.f32 %v1295_v16, %v952_v18 }
 0x311   : > { %v956_v23 = vmul.f32 %v953_v21, %v1614_v1 }
 0x313   : > { %v1222_v24 = vpack.c.bf16 %v956_v23, %v955_v22 }
 0x315   : > { %1223 = vst [vmem:[%s403_s11] sm:$0xff] %v1222_v24  }
 0x316   : > { %1383 = shalt.err (!%p1380_p8)
}
 0x317   : > { %s1434_s21 = smov 64   ;;  %s1435_s30 = smov 4  }
 0x318   : > { %1232 = dma.vmem_to_hbm [thread:$0]  (%p1529_p5), %s975_s12, 128, %s977_s18, %s962_s17, %s1434_s21, %s1434_s21, %s1435_s30  }
 0x319 PF: > { %p1249_p9 = scmp.ge.s32.totalorder %s1426_s16, 2  ;;  %s991_s11 = sand.u32 1, %s1414_s13  }
 0x31a   : > { %s992_s27 = scalar_lea.sflag [#allocation4], %s991_s11 }
 0x31b   : > { %p1242_p10 = pnand %p1249_p9, %p1533_p6 }
 0x31d   : > { %p1243_p11 = pneg %p1242_p10 }
 0x31f   : > { %1409 = dma.done.wait (%p1243_p11), %s992_s27, 128  }
 0x320   : > { %1411 = vsyncadd (%p1243_p11), %s992_s27, 4294967168  ;;  %s1707_s20 = sld [smem:[#allocation11_spill]]  ;;  %p22_p12 = scmp.ge.s32.totalorder %s1516_s19, 4  }
 0x321   : > { %s1708_s13 = smov %s1418_s14  ;;  %s1709_s14 = smov %s1422_s15 }
 0x322   : > { %s1711_s16 = smov %s1516_s19  ;;  %24 = sbr.rel (!%p22_p12) target bundleno = 5 (0x5), region = 115 }
 0x326   : > { %s1710_s15 = smov %s1707_s20 }
 0x327   :  { %998 = vsyncpa [#allocation3], 1 }
 0x328   :  { %1000 = vsyncpa [#allocation3 + $0x1], 1 }
 0x329   :  { %1001 = vsyncpa [#allocation6], 1 }
 0x32a   :  { %1002 = vsyncpa [#allocation4], 1 }
 0x32b   :  { %1004 = vsyncpa [#allocation4 + $0x1], 1 }

</bundles_post_ra>
